<compile_context>
chip_gen: v7x
topology: tpu7x:2x2x1
jax: 0.10.0
libtpu: 0.0.40
codegen_flags: <defaults>
</compile_context>

<pallas_src>
import functools

import jax
import jax.numpy as jnp
from jax import lax
from jax.experimental import pallas as pl
from jax.experimental.pallas import tpu as pltpu

EPS = 1e-5
LANE = 128


def _round_up(n, m):
    return ((n + m - 1) // m) * m


def _bn_train(h, gamma, beta, inv_b):
    # PyTorch BatchNorm1d training mode: biased batch mean/var over axis 0.
    # One-pass stats; gamma folded into the scale so the per-element work is one
    # multiply + one add.  rsqrt goes to the EUP slot (effectively free).
    s1 = jnp.sum(h, axis=0, keepdims=True)
    s2 = jnp.sum(h * h, axis=0, keepdims=True)
    mean = s1 * inv_b
    var = jnp.maximum(s2 * inv_b - mean * mean, 0.0)      # clamp FP cancellation
    scale = gamma * lax.rsqrt(var + EPS)
    shift = beta - mean * scale
    return h * scale + shift


def basic_block_kernel(
    x_ref,
    w1s_ref, w2_ref,
    g1_ref, be1_ref,
    g2_ref, be2_ref,
    gs_ref, bes_ref,
    o_ref,
    *, f_out_p, inv_b,
):
    x = x_ref[...]                                        # (B, F_in_p) compute dtype

    # Fused fc1 + shortcut matmul: one MXU pass over x, f32 accumulation.
    # (Linear biases dropped; they cancel exactly inside training-mode BatchNorm.)
    hc = jnp.dot(x, w1s_ref[...], preferred_element_type=jnp.float32)  # (B, 2*Fp) f32

    # Shortcut BN first so hc is dead before the fc2 matmul (reduces live f32 bytes).
    s = _bn_train(hc[:, f_out_p:], gs_ref[...], bes_ref[...], inv_b)   # (B, Fp) f32

    # bn1 + relu
    h = _bn_train(hc[:, :f_out_p], g1_ref[...], be1_ref[...], inv_b)
    h = jnp.maximum(h, 0.0)

    # fc2 (cast activations to the weight compute dtype for the MXU) + bn2
    h = jnp.dot(h.astype(w2_ref.dtype), w2_ref[...], preferred_element_type=jnp.float32)
    h = _bn_train(h, g2_ref[...], be2_ref[...], inv_b)

    o_ref[...] = jnp.maximum(h + s, 0.0).astype(o_ref.dtype)


def pack_params(params, compute_dtype=jnp.bfloat16):
    """One-time weight packing: transpose, zero-pad to lane multiples, concat fc1+shortcut.

    Done once outside the hot path so per-call HBM traffic is just x and the output.
    """
    F_out, F_in = params["w1"].shape
    F_in_p = _round_up(F_in, LANE)
    F_out_p = _round_up(F_out, LANE)

    def pad_wT(w):  # PyTorch (out, in) -> transposed + zero-padded (F_in_p, F_out_p)
        wt = w.T.astype(compute_dtype)
        return jnp.pad(wt, ((0, F_in_p - wt.shape[0]), (0, F_out_p - wt.shape[1])))

    # fc1 and shortcut weights concatenated along the output-feature axis (one MXU pass).
    w1s = jnp.concatenate([pad_wT(params["w1"]), pad_wT(params["ws"])], axis=1)

    w2t = params["w2"].T.astype(compute_dtype)
    w2p = jnp.pad(w2t, ((0, F_out_p - w2t.shape[0]), (0, F_out_p - w2t.shape[1])))

    def row(v):  # (F_out,) -> zero-padded lane-dense (1, F_out_p) f32 row
        return jnp.pad(v.astype(jnp.float32), (0, F_out_p - v.shape[0])).reshape(1, F_out_p)

    return {
        "w1s": w1s,
        "w2": w2p,
        "g1": row(params["g1"]), "be1": row(params["be1"]),
        "g2": row(params["g2"]), "be2": row(params["be2"]),
        "gs": row(params["gs"]), "bes": row(params["bes"]),
        "F_in": F_in, "F_out": F_out,
        "F_in_p": F_in_p, "F_out_p": F_out_p,
        "compute_dtype": compute_dtype,
    }


def basic_block(x, packed):
    """Fused BasicBlock forward.  x: (B, F_in) float32.

    B should be a multiple of 16 (bf16 path) / 8 (f32 path) so batch-axis loads and
    reductions are un-masked sublane groups; correctness does not require it.
    """
    B, F_in = x.shape
    assert F_in == packed["F_in"]
    cdt = packed["compute_dtype"]
    F_in_p, F_out_p, F_out = packed["F_in_p"], packed["F_out_p"], packed["F_out"]

    xp = jnp.pad(x.astype(cdt), ((0, 0), (0, F_in_p - F_in)))

    args = (
        xp,
        packed["w1s"], packed["w2"],
        packed["g1"], packed["be1"],
        packed["g2"], packed["be2"],
        packed["gs"], packed["bes"],
    )

    # VMEM sizing: resident inputs/outputs + f32 activation temporaries, 2x headroom,
    # clamped to 64 MiB (valid on v7x as well as v5e/v6e).
    wsize = jnp.dtype(cdt).itemsize
    resident = (
        B * F_in_p * wsize                      # x
        + F_in_p * 2 * F_out_p * wsize          # w1s
        + F_out_p * F_out_p * wsize             # w2
        + 6 * 8 * F_out_p * 4                   # BN rows (sublane-padded)
        + B * F_out_p * 4                       # out
        + 4 * B * F_out_p * 4                   # hc / h / s f32 temporaries
    )
    vmem_limit = int(min(max(2 * resident + (8 << 20), 32 << 20), 64 << 20))

    flops = 2 * B * F_in_p * (2 * F_out_p) + 2 * B * F_out_p * F_out_p
    bytes_accessed = int(
        sum(int(a.size) * a.dtype.itemsize for a in args) + B * F_out_p * 4
    )

    kernel = functools.partial(
        basic_block_kernel, f_out_p=F_out_p, inv_b=float(1.0 / B)
    )

    out_p = pl.pallas_call(
        kernel,
        out_shape=jax.ShapeDtypeStruct((B, F_out_p), jnp.float32),
        in_specs=[pl.BlockSpec(memory_space=pltpu.MemorySpace.VMEM)] * len(args),
        out_specs=pl.BlockSpec(memory_space=pltpu.MemorySpace.VMEM),
        compiler_params=pltpu.CompilerParams(vmem_limit_bytes=vmem_limit),
        cost_estimate=pl.CostEstimate(
            flops=flops, transcendentals=3 * F_out_p, bytes_accessed=bytes_accessed
        ),
    )(*args)

    return out_p[:, :F_out]


def basic_block_ref(x, params):
    # Pure-JAX reference with full PyTorch semantics (biases included, training-mode BN).
    def bn(h, g, b):
        m = jnp.mean(h, axis=0, keepdims=True)
        v = jnp.mean((h - m) ** 2, axis=0, keepdims=True)
        return (h - m) / jnp.sqrt(v + EPS) * g + b

    h = x @ params["w1"].T + params["b1"]
    h = jnp.maximum(bn(h, params["g1"], params["be1"]), 0.0)
    h = h @ params["w2"].T + params["b2"]
    h = bn(h, params["g2"], params["be2"])
    s = x @ params["ws"].T + params["bs"]
    s = bn(s, params["gs"], params["bes"])
    return jnp.maximum(h + s, 0.0)


def init_params(key, in_features, out_features):
    ks = jax.random.split(key, 6)
    scale1 = 1.0 / jnp.sqrt(in_features)
    scale2 = 1.0 / jnp.sqrt(out_features)
    return {
        # fc1: (out, in) like PyTorch
        "w1": jax.random.uniform(ks[0], (out_features, in_features), jnp.float32, -scale1, scale1),
        "b1": jax.random.uniform(ks[1], (out_features,), jnp.float32, -scale1, scale1),
        "g1": jnp.ones((out_features,), jnp.float32),
        "be1": jnp.zeros((out_features,), jnp.float32),
        # fc2
        "w2": jax.random.uniform(ks[2], (out_features, out_features), jnp.float32, -scale2, scale2),
        "b2": jax.random.uniform(ks[3], (out_features,), jnp.float32, -scale2, scale2),
        "g2": jnp.ones((out_features,), jnp.float32),
        "be2": jnp.zeros((out_features,), jnp.float32),
        # shortcut Linear + BN (in_features != out_features)
        "ws": jax.random.uniform(ks[4], (out_features, in_features), jnp.float32, -scale1, scale1),
        "bs": jax.random.uniform(ks[5], (out_features,), jnp.float32, -scale1, scale1),
        "gs": jnp.ones((out_features,), jnp.float32),
        "bes": jnp.zeros((out_features,), jnp.float32),
    }


if __name__ == "__main__":
    key = jax.random.PRNGKey(0)
    k_x, k_p = jax.random.split(key)

    # B is a multiple of 16 (one packed bf16 sublane group) and gives the MXU a
    # real M dimension; feature dims stay small.
    B, IN_F, OUT_F = 128, 64, 128
    x = jax.random.normal(k_x, (B, IN_F), jnp.float32)
    params = init_params(k_p, IN_F, OUT_F)

    ref = basic_block_ref(x, params)

    # Production path: bf16 weights/activations on the MXU, f32 accumulation + BN math.
    packed_bf16 = jax.tree.map(jax.block_until_ready,
                               pack_params(params, compute_dtype=jnp.bfloat16),
                               is_leaf=lambda a: isinstance(a, jax.Array))
    out = jax.block_until_ready(basic_block(x, packed_bf16))
    assert out.shape == (B, OUT_F)
    assert jnp.allclose(out, ref, atol=2e-1, rtol=2e-1), "bf16 kernel mismatch vs reference"

    # Validation path: f32 end-to-end, near bit-exact vs reference.
    packed_f32 = pack_params(params, compute_dtype=jnp.float32)
    out_f32 = jax.block_until_ready(basic_block(x, packed_f32))
    assert out_f32.shape == (B, OUT_F)
    assert jnp.allclose(out_f32, ref, atol=1e-3, rtol=1e-3), "f32 kernel mismatch vs reference"

    print("KERNEL_OK")
</pallas_src>

<mosaic_0001>
module attributes {stable_mosaic.version = 11 : i64} {
  func.func @basic_block_kernel(%arg0: memref<128x128xbf16, #tpu.memory_space<vmem>>, %arg1: memref<128x256xbf16, #tpu.memory_space<vmem>>, %arg2: memref<128x128xbf16, #tpu.memory_space<vmem>>, %arg3: memref<1x128xf32, #tpu.memory_space<vmem>>, %arg4: memref<1x128xf32, #tpu.memory_space<vmem>>, %arg5: memref<1x128xf32, #tpu.memory_space<vmem>>, %arg6: memref<1x128xf32, #tpu.memory_space<vmem>>, %arg7: memref<1x128xf32, #tpu.memory_space<vmem>>, %arg8: memref<1x128xf32, #tpu.memory_space<vmem>>, %arg9: memref<128x128xf32, #tpu.memory_space<vmem>>) attributes {dimension_semantics = [], scalar_prefetch = 0 : i64, scratch_operands = 0 : i64, tpu.core_type = #tpu.core_type<tc>} {
    %c0 = arith.constant 0 : index
    %c0_0 = arith.constant 0 : index
    %0 = vector.load %arg0[%c0, %c0_0] : memref<128x128xbf16, #tpu.memory_space<vmem>>, vector<128x128xbf16>
    %c0_1 = arith.constant 0 : index
    %c0_2 = arith.constant 0 : index
    %1 = vector.load %arg1[%c0_1, %c0_2] : memref<128x256xbf16, #tpu.memory_space<vmem>>, vector<128x256xbf16>
    %cst = arith.constant dense<0.000000e+00> : vector<128x256xf32>
    %2 = tpu.matmul %0, %1, %cst {dimension_numbers = #tpu.dot_dimension_numbers<[1], [0], [0], [1], [0, 0, 1, 1], [], []>} : vector<128x128xbf16>, vector<128x256xbf16>, vector<128x256xf32> -> vector<128x256xf32>
    %3 = vector.extract_strided_slice %2 {offsets = [0, 128], sizes = [128, 128], strides = [1, 1]} : vector<128x256xf32> to vector<128x128xf32>
    %c0_3 = arith.constant 0 : index
    %c0_4 = arith.constant 0 : index
    %4 = vector.load %arg7[%c0_3, %c0_4] : memref<1x128xf32, #tpu.memory_space<vmem>>, vector<1x128xf32>
    %c0_5 = arith.constant 0 : index
    %c0_6 = arith.constant 0 : index
    %5 = vector.load %arg8[%c0_5, %c0_6] : memref<1x128xf32, #tpu.memory_space<vmem>>, vector<1x128xf32>
    %cst_7 = arith.constant dense<0.000000e+00> : vector<128xf32>
    %6 = vector.multi_reduction <add>, %3, %cst_7 [0] : vector<128x128xf32> to vector<128xf32>
    %7 = vector.shape_cast %6 : vector<128xf32> to vector<1x128xf32>
    %8 = arith.mulf %3, %3 : vector<128x128xf32>
    %cst_8 = arith.constant dense<0.000000e+00> : vector<128xf32>
    %9 = vector.multi_reduction <add>, %8, %cst_8 [0] : vector<128x128xf32> to vector<128xf32>
    %10 = vector.shape_cast %9 : vector<128xf32> to vector<1x128xf32>
    %cst_9 = arith.constant 7.812500e-03 : f32
    %11 = vector.broadcast %cst_9 : f32 to vector<1x128xf32>
    %12 = arith.mulf %7, %11 : vector<1x128xf32>
    %cst_10 = arith.constant 7.812500e-03 : f32
    %13 = vector.broadcast %cst_10 : f32 to vector<1x128xf32>
    %14 = arith.mulf %10, %13 : vector<1x128xf32>
    %15 = arith.mulf %12, %12 : vector<1x128xf32>
    %16 = arith.subf %14, %15 : vector<1x128xf32>
    %cst_11 = arith.constant 0.000000e+00 : f32
    %17 = vector.broadcast %cst_11 : f32 to vector<1x128xf32>
    %18 = arith.maximumf %16, %17 : vector<1x128xf32>
    %cst_12 = arith.constant 9.99999974E-6 : f32
    %19 = vector.broadcast %cst_12 : f32 to vector<1x128xf32>
    %20 = arith.addf %18, %19 : vector<1x128xf32>
    %21 = math.rsqrt %20 : vector<1x128xf32>
    %22 = arith.mulf %4, %21 : vector<1x128xf32>
    %23 = arith.mulf %12, %22 : vector<1x128xf32>
    %24 = arith.subf %5, %23 : vector<1x128xf32>
    %25 = vector.broadcast %22 : vector<1x128xf32> to vector<128x128xf32>
    %26 = arith.mulf %3, %25 : vector<128x128xf32>
    %27 = vector.broadcast %24 : vector<1x128xf32> to vector<128x128xf32>
    %28 = arith.addf %26, %27 : vector<128x128xf32>
    %29 = vector.extract_strided_slice %2 {offsets = [0, 0], sizes = [128, 128], strides = [1, 1]} : vector<128x256xf32> to vector<128x128xf32>
    %c0_13 = arith.constant 0 : index
    %c0_14 = arith.constant 0 : index
    %30 = vector.load %arg3[%c0_13, %c0_14] : memref<1x128xf32, #tpu.memory_space<vmem>>, vector<1x128xf32>
    %c0_15 = arith.constant 0 : index
    %c0_16 = arith.constant 0 : index
    %31 = vector.load %arg4[%c0_15, %c0_16] : memref<1x128xf32, #tpu.memory_space<vmem>>, vector<1x128xf32>
    %cst_17 = arith.constant dense<0.000000e+00> : vector<128xf32>
    %32 = vector.multi_reduction <add>, %29, %cst_17 [0] : vector<128x128xf32> to vector<128xf32>
    %33 = vector.shape_cast %32 : vector<128xf32> to vector<1x128xf32>
    %34 = arith.mulf %29, %29 : vector<128x128xf32>
    %cst_18 = arith.constant dense<0.000000e+00> : vector<128xf32>
    %35 = vector.multi_reduction <add>, %34, %cst_18 [0] : vector<128x128xf32> to vector<128xf32>
    %36 = vector.shape_cast %35 : vector<128xf32> to vector<1x128xf32>
    %cst_19 = arith.constant 7.812500e-03 : f32
    %37 = vector.broadcast %cst_19 : f32 to vector<1x128xf32>
    %38 = arith.mulf %33, %37 : vector<1x128xf32>
    %cst_20 = arith.constant 7.812500e-03 : f32
    %39 = vector.broadcast %cst_20 : f32 to vector<1x128xf32>
    %40 = arith.mulf %36, %39 : vector<1x128xf32>
    %41 = arith.mulf %38, %38 : vector<1x128xf32>
    %42 = arith.subf %40, %41 : vector<1x128xf32>
    %cst_21 = arith.constant 0.000000e+00 : f32
    %43 = vector.broadcast %cst_21 : f32 to vector<1x128xf32>
    %44 = arith.maximumf %42, %43 : vector<1x128xf32>
    %cst_22 = arith.constant 9.99999974E-6 : f32
    %45 = vector.broadcast %cst_22 : f32 to vector<1x128xf32>
    %46 = arith.addf %44, %45 : vector<1x128xf32>
    %47 = math.rsqrt %46 : vector<1x128xf32>
    %48 = arith.mulf %30, %47 : vector<1x128xf32>
    %49 = arith.mulf %38, %48 : vector<1x128xf32>
    %50 = arith.subf %31, %49 : vector<1x128xf32>
    %51 = vector.broadcast %48 : vector<1x128xf32> to vector<128x128xf32>
    %52 = arith.mulf %29, %51 : vector<128x128xf32>
    %53 = vector.broadcast %50 : vector<1x128xf32> to vector<128x128xf32>
    %54 = arith.addf %52, %53 : vector<128x128xf32>
    %cst_23 = arith.constant 0.000000e+00 : f32
    %55 = vector.broadcast %cst_23 : f32 to vector<128x128xf32>
    %56 = arith.maximumf %54, %55 : vector<128x128xf32>
    %57 = arith.truncf %56 : vector<128x128xf32> to vector<128x128xbf16>
    %c0_24 = arith.constant 0 : index
    %c0_25 = arith.constant 0 : index
    %58 = vector.load %arg2[%c0_24, %c0_25] : memref<128x128xbf16, #tpu.memory_space<vmem>>, vector<128x128xbf16>
    %cst_26 = arith.constant dense<0.000000e+00> : vector<128x128xf32>
    %59 = tpu.matmul %57, %58, %cst_26 {dimension_numbers = #tpu.dot_dimension_numbers<[1], [0], [0], [1], [0, 0, 1, 1], [], []>} : vector<128x128xbf16>, vector<128x128xbf16>, vector<128x128xf32> -> vector<128x128xf32>
    %c0_27 = arith.constant 0 : index
    %c0_28 = arith.constant 0 : index
    %60 = vector.load %arg5[%c0_27, %c0_28] : memref<1x128xf32, #tpu.memory_space<vmem>>, vector<1x128xf32>
    %c0_29 = arith.constant 0 : index
    %c0_30 = arith.constant 0 : index
    %61 = vector.load %arg6[%c0_29, %c0_30] : memref<1x128xf32, #tpu.memory_space<vmem>>, vector<1x128xf32>
    %cst_31 = arith.constant dense<0.000000e+00> : vector<128xf32>
    %62 = vector.multi_reduction <add>, %59, %cst_31 [0] : vector<128x128xf32> to vector<128xf32>
    %63 = vector.shape_cast %62 : vector<128xf32> to vector<1x128xf32>
    %64 = arith.mulf %59, %59 : vector<128x128xf32>
    %cst_32 = arith.constant dense<0.000000e+00> : vector<128xf32>
    %65 = vector.multi_reduction <add>, %64, %cst_32 [0] : vector<128x128xf32> to vector<128xf32>
    %66 = vector.shape_cast %65 : vector<128xf32> to vector<1x128xf32>
    %cst_33 = arith.constant 7.812500e-03 : f32
    %67 = vector.broadcast %cst_33 : f32 to vector<1x128xf32>
    %68 = arith.mulf %63, %67 : vector<1x128xf32>
    %cst_34 = arith.constant 7.812500e-03 : f32
    %69 = vector.broadcast %cst_34 : f32 to vector<1x128xf32>
    %70 = arith.mulf %66, %69 : vector<1x128xf32>
    %71 = arith.mulf %68, %68 : vector<1x128xf32>
    %72 = arith.subf %70, %71 : vector<1x128xf32>
    %cst_35 = arith.constant 0.000000e+00 : f32
    %73 = vector.broadcast %cst_35 : f32 to vector<1x128xf32>
    %74 = arith.maximumf %72, %73 : vector<1x128xf32>
    %cst_36 = arith.constant 9.99999974E-6 : f32
    %75 = vector.broadcast %cst_36 : f32 to vector<1x128xf32>
    %76 = arith.addf %74, %75 : vector<1x128xf32>
    %77 = math.rsqrt %76 : vector<1x128xf32>
    %78 = arith.mulf %60, %77 : vector<1x128xf32>
    %79 = arith.mulf %68, %78 : vector<1x128xf32>
    %80 = arith.subf %61, %79 : vector<1x128xf32>
    %81 = vector.broadcast %78 : vector<1x128xf32> to vector<128x128xf32>
    %82 = arith.mulf %59, %81 : vector<128x128xf32>
    %83 = vector.broadcast %80 : vector<1x128xf32> to vector<128x128xf32>
    %84 = arith.addf %82, %83 : vector<128x128xf32>
    %85 = arith.addf %84, %28 : vector<128x128xf32>
    %cst_37 = arith.constant 0.000000e+00 : f32
    %86 = vector.broadcast %cst_37 : f32 to vector<128x128xf32>
    %87 = arith.maximumf %85, %86 : vector<128x128xf32>
    %c0_38 = arith.constant 0 : index
    %c0_39 = arith.constant 0 : index
    %88 = vector.load %arg9[%c0_38, %c0_39] : memref<128x128xf32, #tpu.memory_space<vmem>>, vector<128x128xf32>
    tpu.vector_store %arg9[%c0_38, %c0_39], %87 {strides = array<i32>} : memref<128x128xf32, #tpu.memory_space<vmem>>, vector<128x128xf32>,
    return
  }
}

</mosaic_0001>

<bundles_post_ra>
// kernel: tpu_custom_call.1
= control target key start
LH: loop header
LB: loop body
LE: loop exit
PB: predicated region body
PF: predicated region fallthrough
CT: control target
= control target key end

     0   :  { %14 = vsyncpa [#allocation3], 0  ;;  %s1657_s0 = inlined_call_operand.hbm [shape: bf16[128,128], index: 0, kind: input, shape index: {}]   ;;  %s1658_s1 = inlined_call_operand.hbm [shape: bf16[128,256], index: 1, kind: input, shape index: {}]   ;;  %s1659_s2 = inlined_call_operand.hbm [shape: bf16[128,128], index: 2, kind: input, shape index: {}]   ;;  %s1660_s3 = inlined_call_operand.vmem [shape: f32[1,128], index: 3, kind: input, shape index: {}]   ;;  %s1661_s4 = inlined_call_operand.vmem [shape: f32[1,128], index: 4, kind: input, shape index: {}]   ;;  %s1662_s5 = inlined_call_operand.vmem [shape: f32[1,128], index: 5, kind: input, shape index: {}]   ;;  %s1663_s6 = inlined_call_operand.vmem [shape: f32[1,128], index: 6, kind: input, shape index: {}]   ;;  %s1664_s7 = inlined_call_operand.vmem [shape: f32[1,128], index: 7, kind: input, shape index: {}]   ;;  %s1665_s8 = inlined_call_operand.vmem [shape: f32[1,128], index: 8, kind: input, shape index: {}]   ;;  %s1666_s9 = inlined_call_operand.hbm [shape: f32[128,128], index: 9, kind: output, shape index: {}]  }
   0x1   :  { %15 = vsyncpa [#allocation6], 0 }
   0x2   :  { %16 = vsyncpa [#allocation4], 0  ;;  %s1170_s30 = smov [#allocation5]   ;;  %s1076_s13 = scalar_lea.hbm %s1658_s1, 2048 }
   0x3   :  { %s34_s10 = sshll.u32 %s1170_s30, 4  ;;  %p1077_p0 = scmp.ne.s32.totalorder %s1658_s1, %s1076_s13  ;;  %s35_s10 = int_to_ptr.vmem [resolvable:$true] %s34_s10 }
   0x4   :  { %p1080_p1 = scmp.lt.u32.totalorder %s1076_s13, %s1658_s1 }
   0x6   :  { %p1082_p2 = pnand %p1080_p1, %p1077_p0 }
   0x8   :  { %1085 = shalt.err (!%p1082_p2)
}
   0x9   :  { %s1086_s18 = scalar_lea.vmem %s35_s10, 2048  ;;  %p1091_p4 = scmp.lt.s32.totalorder %s35_s10, %s35_s10 }
   0xa   :  { %p1087_p3 = scmp.ne.s32.totalorder %s35_s10, %s1086_s18  ;;  %p1092_p5 = scmp.lt.s32.totalorder %s1086_s18, %s1086_s18 }
   0xc   :  { %p1093_p6 = por %p1092_p5, %p1091_p4 }
   0xe   :  { %p1094_p7 = pnand %p1093_p6, %p1087_p3 }
  0x10   :  { %1097 = shalt.err (!%p1094_p7)
}
  0x11   :  { %s1171_s19 = smov 128   ;;  %s1172_s20 = smov 8  }
  0x12   :  { %40 = dma.hbm_to_vmem [thread:$0]  %s1658_s1, 2048, %s35_s10, [#allocation6], %s1171_s19, %s1171_s19, %s1172_s20  }
  0x13   :  { %s1173_s23 = smov [#allocation2]   ;;  %s1098_s27 = scalar_lea.hbm %s1657_s0, 1024 }
  0x14   :  { %s22_s24 = sshll.u32 %s1173_s23, 4  ;;  %p1099_p8 = scmp.ne.s32.totalorder %s1657_s0, %s1098_s27  ;;  %s23_s24 = int_to_ptr.vmem [resolvable:$true] %s22_s24 }
  0x15   :  { %p1102_p9 = scmp.lt.u32.totalorder %s1098_s27, %s1657_s0 }
  0x17   :  { %p1104_p10 = pnand %p1102_p9, %p1099_p8 }
  0x19   :  { %1107 = shalt.err (!%p1104_p10)
}
  0x1a   :  { %s1108_s12 = scalar_lea.vmem %s23_s24, 1024  ;;  %p1113_p12 = scmp.lt.s32.totalorder %s23_s24, %s23_s24 }
  0x1b   :  { %p1109_p11 = scmp.ne.s32.totalorder %s23_s24, %s1108_s12  ;;  %p1114_p13 = scmp.lt.s32.totalorder %s1108_s12, %s1108_s12 }
  0x1d   :  { %p1115_p0 = por %p1114_p13, %p1113_p12 }
  0x1f   :  { %p1116_p1 = pnand %p1115_p0, %p1109_p11 }
  0x21   :  { %1119 = shalt.err (!%p1116_p1)
}
  0x22   :  { %s1174_s1 = smov 64   ;;  %s1175_s10 = smov 4  }
  0x23   :  { %28 = dma.hbm_to_vmem [thread:$0]  %s1657_s0, 1024, %s23_s24, [#allocation3], %s1174_s1, %s1174_s1, %s1175_s10  }
  0x24   :  { %s1176_s15 = smov [#allocation7]   ;;  %s1120_s21 = scalar_lea.hbm %s1659_s2, 1024 }
  0x25   :  { %s46_s16 = sshll.u32 %s1176_s15, 4  ;;  %p1121_p2 = scmp.ne.s32.totalorder %s1659_s2, %s1120_s21  ;;  %s47_s16 = int_to_ptr.vmem [resolvable:$true] %s46_s16 }
  0x26   :  { %p1124_p3 = scmp.lt.u32.totalorder %s1120_s21, %s1659_s2 }
  0x28   :  { %p1126_p4 = pnand %p1124_p3, %p1121_p2 }
  0x2a   :  { %1129 = shalt.err (!%p1126_p4)
}
  0x2b   :  { %s1130_s27 = scalar_lea.vmem %s47_s16, 1024  ;;  %p1135_p6 = scmp.lt.s32.totalorder %s47_s16, %s47_s16 }
  0x2c   :  { %p1131_p5 = scmp.ne.s32.totalorder %s47_s16, %s1130_s27  ;;  %p1136_p7 = scmp.lt.s32.totalorder %s1130_s27, %s1130_s27 }
  0x2e   :  { %p1137_p8 = por %p1136_p7, %p1135_p6 }
  0x30   :  { %p1138_p9 = pnand %p1137_p8, %p1131_p5 }
  0x32   :  { %1141 = shalt.err (!%p1138_p9)
}
  0x33   :  { %52 = dma.hbm_to_vmem [thread:$0]  %s1659_s2, 1024, %s47_s16, [#allocation6], %s1174_s1, %s1174_s1, %s1175_s10  }
  0x34   :  { %1164 = dma.done.wait [#allocation3], 1024  }
  0x35   :  { %1165 = vsyncadd [#allocation3], 4294966272 }
  0x36   :  { %1166 = dma.done.wait [#allocation6], 3072  }
  0x37   :  { %1167 = vsyncadd [#allocation6], 4294964224  ;;  %v1177_v0 = vmov 0   ;;  %v1030_v1 = vld [vmem:[#allocation5 + $0x4] ss:$8 sps:$4 sm:$0xff]   ;;  %v1056_v19 = vld [vmem:[#allocation2 + $0x10] sm:$0xff]  }
  0x38   :  { %267 = vmatprep.mubr.bf16.mxu0 %v1177_v0  ;;  %v1032_v2 = vld [vmem:[#allocation5] ss:$8 sps:$4 sm:$0xff]   ;;  %235 = vmatprep.subr.bf16.mxu0 %v1030_v1  ;;  %v1033_v3 = vld [vmem:[#allocation5 + $0x14] ss:$8 sps:$4 sm:$0xff]   ;;  %v1035_v4 = vld [vmem:[#allocation5 + $0x10] ss:$8 sps:$4 sm:$0xff]  }
  0x39   :  { %236 = vmatpush1.bf16.msra.mxu0 %v1032_v2  ;;  %v1036_v5 = vld [vmem:[#allocation5 + $0x24] ss:$8 sps:$4 sm:$0xff]   ;;  %v1038_v6 = vld [vmem:[#allocation5 + $0x20] ss:$8 sps:$4 sm:$0xff]   ;;  %v1039_v7 = vld [vmem:[#allocation5 + $0x34] ss:$8 sps:$4 sm:$0xff]  }
  0x3a   :  { %237 = vmatprep.subr.bf16.mxu0 %v1033_v3  ;;  %v1041_v8 = vld [vmem:[#allocation5 + $0x30] ss:$8 sps:$4 sm:$0xff]   ;;  %v1042_v9 = vld [vmem:[#allocation5 + $0x44] ss:$8 sps:$4 sm:$0xff]   ;;  %v1044_v10 = vld [vmem:[#allocation5 + $0x40] ss:$8 sps:$4 sm:$0xff]  }
  0x3b   :  { %v1045_v11 = vld [vmem:[#allocation5 + $0x54] ss:$8 sps:$4 sm:$0xff]   ;;  %v1047_v12 = vld [vmem:[#allocation5 + $0x50] ss:$8 sps:$4 sm:$0xff]   ;;  %v1048_v13 = vld [vmem:[#allocation5 + $0x64] ss:$8 sps:$4 sm:$0xff]  }
  0x3c   :  { %v1050_v14 = vld [vmem:[#allocation5 + $0x60] ss:$8 sps:$4 sm:$0xff]   ;;  %v1051_v15 = vld [vmem:[#allocation5 + $0x74] ss:$8 sps:$4 sm:$0xff]   ;;  %v1053_v16 = vld [vmem:[#allocation5 + $0x70] ss:$8 sps:$4 sm:$0xff]  }
  0x3d   :  { %238 = vmatpush1.bf16.msra.mxu0 %v1035_v4  ;;  %v1054_v17 = vld [vmem:[#allocation2] sm:$0xff]   ;;  %v1055_v18 = vld [vmem:[#allocation2 + $0x8] sm:$0xff]   ;;  %v1057_v20 = vld [vmem:[#allocation2 + $0x18] sm:$0xff]  }
  0x3e   :  { %239 = vmatprep.subr.bf16.mxu0 %v1036_v5  ;;  %v1058_v21 = vld [vmem:[#allocation2 + $0x20] sm:$0xff]   ;;  %v1059_v22 = vld [vmem:[#allocation2 + $0x28] sm:$0xff]   ;;  %v1060_v23 = vld [vmem:[#allocation2 + $0x30] sm:$0xff]  }
  0x3f   :  { %v1061_v24 = vld [vmem:[#allocation2 + $0x38] sm:$0xff]   ;;  %v1062_v25 = vld [vmem:[#allocation7] sm:$0xff]   ;;  %v1063_v26 = vld [vmem:[#allocation7 + $0x8] sm:$0xff]  }
  0x40   :  { %989 = vmatprep.subr.bf16.mxu1 %v1062_v25  ;;  %v1064_v27 = vld [vmem:[#allocation7 + $0x10] sm:$0xff]   ;;  %v1065_v28 = vld [vmem:[#allocation7 + $0x18] sm:$0xff]   ;;  %v1066_v29 = vld [vmem:[#allocation7 + $0x20] sm:$0xff]  }
  0x41   :  { %240 = vmatpush1.bf16.msra.mxu0 %v1038_v6  ;;  %990 = vmatpush3.bf16.msra.mxu1 %v1062_v25  ;;  %v1067_v30 = vld [vmem:[#allocation7 + $0x28] sm:$0xff]   ;;  %v1068_v31 = vld [vmem:[#allocation7 + $0x30] sm:$0xff]   ;;  %v1069_v32 = vld [vmem:[#allocation7 + $0x38] sm:$0xff]  }
  0x42   :  { %241 = vmatprep.subr.bf16.mxu0 %v1039_v7  ;;  %991 = vmatprep.subr.bf16.mxu1 %v1063_v26 }
  0x45   :  { %242 = vmatpush1.bf16.msra.mxu0 %v1041_v8  ;;  %992 = vmatpush3.bf16.msra.mxu1 %v1063_v26 }
  0x46   :  { %243 = vmatprep.subr.bf16.mxu0 %v1042_v9  ;;  %993 = vmatprep.subr.bf16.mxu1 %v1064_v27 }
  0x49   :  { %244 = vmatpush1.bf16.msra.mxu0 %v1044_v10  ;;  %994 = vmatpush3.bf16.msra.mxu1 %v1064_v27 }
  0x4a   :  { %245 = vmatprep.subr.bf16.mxu0 %v1045_v11  ;;  %995 = vmatprep.subr.bf16.mxu1 %v1065_v28 }
  0x4d   :  { %246 = vmatpush1.bf16.msra.mxu0 %v1047_v12  ;;  %996 = vmatpush3.bf16.msra.mxu1 %v1065_v28 }
  0x4e   :  { %247 = vmatprep.subr.bf16.mxu0 %v1048_v13  ;;  %997 = vmatprep.subr.bf16.mxu1 %v1066_v29 }
  0x51   :  { %248 = vmatpush1.bf16.msra.mxu0 %v1050_v14  ;;  %998 = vmatpush3.bf16.msra.mxu1 %v1066_v29 }
  0x52   :  { %249 = vmatprep.subr.bf16.mxu0 %v1051_v15  ;;  %999 = vmatprep.subr.bf16.mxu1 %v1067_v30 }
  0x55   :  { %250 = vmatpush1.bf16.msra.mxu0 %v1053_v16  ;;  %1000 = vmatpush3.bf16.msra.mxu1 %v1067_v30 }
  0x56   :  { %1001 = vmatprep.subr.bf16.mxu1 %v1068_v31 }
  0x58   :  { %268 = vmatmul.mubr.bf16.vlgmr.msra.gmra.mrb[0].mxu0 %v1054_v17 }
  0x59   :  { %277 = vmatprep.mubr.bf16.mxu0 %v1177_v0  ;;  %1002 = vmatpush3.bf16.msra.mxu1 %v1068_v31 }
  0x5a   :  { %1003 = vmatprep.subr.bf16.mxu1 %v1069_v32 }
  0x5d   :  { %1004 = vmatpush3.bf16.msra.mxu1 %v1069_v32 }
  0x60   :  { %278 = vmatmul.mubr.bf16.gmra.mrb[4].mxu0 %v1055_v18 }
  0x61   :  { %287 = vmatprep.mubr.bf16.mxu0 %v1177_v0 }
  0x68   :  { %288 = vmatmul.mubr.bf16.gmra.mrb[8].mxu0 %v1056_v19 }
  0x69   :  { %297 = vmatprep.mubr.bf16.mxu0 %v1177_v0 }
  0x70   :  { %298 = vmatmul.mubr.bf16.gmra.mrb[12].mxu0 %v1057_v20 }
  0x71   :  { %307 = vmatprep.mubr.bf16.mxu0 %v1177_v0 }
  0x78   :  { %308 = vmatmul.mubr.bf16.gmra.mrb[16].mxu0 %v1058_v21 }
  0x79   :  { %317 = vmatprep.mubr.bf16.mxu0 %v1177_v0 }
  0x80   :  { %318 = vmatmul.mubr.bf16.gmra.mrb[20].mxu0 %v1059_v22 }
  0x81   :  { %327 = vmatprep.mubr.bf16.mxu0 %v1177_v0 }
  0x88   :  { %328 = vmatmul.mubr.bf16.gmra.mrb[24].mxu0 %v1060_v23 }
  0x89   :  { %337 = vmatprep.mubr.bf16.mxu0 %v1177_v0 }
  0x90   :  { %338 = vmatmul.mubr.bf16.gmra.mrb[28].mxu0 %v1061_v24 }
 0x12b   :  { %v1268_v33 = vpop.f32.mrb[0].mxu0 }
 0x12c   :  { %v1270_v34 = vpop.f32.mrb[1].mxu0  ;;  %v485_v36 = vmul.f32 %v1268_v33, %v1268_v33 }
 0x12d   :  { %v1272_v35 = vpop.f32.mrb[2].mxu0  ;;  %v371_v40 = vmul.f32 %v1270_v34, %v1270_v34 }
 0x12e   :  { %v464_v37 = vadd.f32 %v1272_v35, %v1268_v33  ;;  %v486_v38 = vmul.f32 %v1272_v35, %v1272_v35  ;;  %v1280_v39 = vpop.f32.mrb[3].mxu0 }
 0x12f   :  { %v350_v41 = vadd.f32 %v1280_v39, %v1270_v34  ;;  %v372_v42 = vmul.f32 %v1280_v39, %v1280_v39 }
 0x130   :  { %v501_v43 = vadd.f32 %v486_v38, %v485_v36 }
 0x131   :  { %v387_v44 = vadd.f32 %v372_v42, %v371_v40 }
 0x133   :  { %v1288_v45 = vpop.f32.mrb[4].mxu0 }
 0x134   :  { %v465_v46 = vadd.f32 %v464_v37, %v1288_v45  ;;  %v487_v47 = vmul.f32 %v1288_v45, %v1288_v45  ;;  %v1293_v48 = vpop.f32.mrb[5].mxu0 }
 0x135   :  { %v351_v49 = vadd.f32 %v350_v41, %v1293_v48  ;;  %v373_v50 = vmul.f32 %v1293_v48, %v1293_v48  ;;  %v1298_v51 = vpop.f32.mrb[6].mxu0 }
 0x136   :  { %v502_v52 = vadd.f32 %v501_v43, %v487_v47  ;;  %v466_v53 = vadd.f32 %v465_v46, %v1298_v51  ;;  %v488_v54 = vmul.f32 %v1298_v51, %v1298_v51  ;;  %v1303_v55 = vpop.f32.mrb[7].mxu0 }
 0x137   :  { %v388_v56 = vadd.f32 %v387_v44, %v373_v50  ;;  %v352_v57 = vadd.f32 %v351_v49, %v1303_v55  ;;  %v374_v58 = vmul.f32 %v1303_v55, %v1303_v55 }
 0x138   :  { %v503_v59 = vadd.f32 %v502_v52, %v488_v54 }
 0x139   :  { %v389_v60 = vadd.f32 %v388_v56, %v374_v58 }
 0x13b   :  { %v1308_v61 = vpop.f32.mrb[8].mxu0 }
 0x13c   :  { %v467_v62 = vadd.f32 %v466_v53, %v1308_v61  ;;  %v489_v63 = vmul.f32 %v1308_v61, %v1308_v61  ;;  %v1313_v0 = vpop.f32.mrb[9].mxu0 }
 0x13d   :  { %v353_v1 = vadd.f32 %v352_v57, %v1313_v0  ;;  %v375_v2 = vmul.f32 %v1313_v0, %v1313_v0  ;;  %v1318_v3 = vpop.f32.mrb[10].mxu0 }
 0x13e   :  { %v504_v4 = vadd.f32 %v503_v59, %v489_v63  ;;  %v468_v5 = vadd.f32 %v467_v62, %v1318_v3  ;;  %v490_v6 = vmul.f32 %v1318_v3, %v1318_v3  ;;  %v1323_v7 = vpop.f32.mrb[11].mxu0 }
 0x13f   :  { %v390_v8 = vadd.f32 %v389_v60, %v375_v2  ;;  %v354_v9 = vadd.f32 %v353_v1, %v1323_v7  ;;  %v376_v10 = vmul.f32 %v1323_v7, %v1323_v7 }
 0x140   :  { %v505_v11 = vadd.f32 %v504_v4, %v490_v6 }
 0x141   :  { %v391_v12 = vadd.f32 %v390_v8, %v376_v10 }
 0x143   :  { %v1328_v13 = vpop.f32.mrb[12].mxu0 }
 0x144   :  { %v469_v14 = vadd.f32 %v468_v5, %v1328_v13  ;;  %v491_v15 = vmul.f32 %v1328_v13, %v1328_v13  ;;  %v1333_v16 = vpop.f32.mrb[13].mxu0 }
 0x145   :  { %v355_v17 = vadd.f32 %v354_v9, %v1333_v16  ;;  %v377_v18 = vmul.f32 %v1333_v16, %v1333_v16  ;;  %v1338_v19 = vpop.f32.mrb[14].mxu0 }
 0x146   :  { %v506_v20 = vadd.f32 %v505_v11, %v491_v15  ;;  %v470_v21 = vadd.f32 %v469_v14, %v1338_v19  ;;  %v492_v22 = vmul.f32 %v1338_v19, %v1338_v19  ;;  %v1343_v23 = vpop.f32.mrb[15].mxu0 }
 0x147   :  { %v392_v24 = vadd.f32 %v391_v12, %v377_v18  ;;  %v356_v25 = vadd.f32 %v355_v17, %v1343_v23  ;;  %v378_v26 = vmul.f32 %v1343_v23, %v1343_v23 }
 0x148   :  { %v507_v27 = vadd.f32 %v506_v20, %v492_v22 }
 0x149   :  { %v393_v28 = vadd.f32 %v392_v24, %v378_v26 }
 0x14b   :  { %v1348_v29 = vpop.f32.mrb[16].mxu0 }
 0x14c   :  { %v471_v30 = vadd.f32 %v470_v21, %v1348_v29  ;;  %v493_v31 = vmul.f32 %v1348_v29, %v1348_v29  ;;  %v1353_v32 = vpop.f32.mrb[17].mxu0 }
 0x14d   :  { %v357_v36 = vadd.f32 %v356_v25, %v1353_v32  ;;  %v379_v37 = vmul.f32 %v1353_v32, %v1353_v32  ;;  %v1358_v38 = vpop.f32.mrb[18].mxu0 }
 0x14e   :  { %v508_v40 = vadd.f32 %v507_v27, %v493_v31  ;;  %v472_v41 = vadd.f32 %v471_v30, %v1358_v38  ;;  %v494_v42 = vmul.f32 %v1358_v38, %v1358_v38  ;;  %v1363_v43 = vpop.f32.mrb[19].mxu0 }
 0x14f   :  { %v394_v44 = vadd.f32 %v393_v28, %v379_v37  ;;  %v358_v46 = vadd.f32 %v357_v36, %v1363_v43  ;;  %v380_v47 = vmul.f32 %v1363_v43, %v1363_v43 }
 0x150   :  { %v509_v49 = vadd.f32 %v508_v40, %v494_v42 }
 0x151   :  { %v395_v50 = vadd.f32 %v394_v44, %v380_v47 }
 0x153   :  { %v1368_v52 = vpop.f32.mrb[20].mxu0 }
 0x154   :  { %v473_v53 = vadd.f32 %v472_v41, %v1368_v52  ;;  %v495_v54 = vmul.f32 %v1368_v52, %v1368_v52  ;;  %v1373_v56 = vpop.f32.mrb[21].mxu0 }
 0x155   :  { %v359_v57 = vadd.f32 %v358_v46, %v1373_v56  ;;  %v381_v58 = vmul.f32 %v1373_v56, %v1373_v56  ;;  %v1378_v59 = vpop.f32.mrb[22].mxu0 }
 0x156   :  { %v510_v60 = vadd.f32 %v509_v49, %v495_v54  ;;  %v474_v62 = vadd.f32 %v473_v53, %v1378_v59  ;;  %v496_v63 = vmul.f32 %v1378_v59, %v1378_v59  ;;  %v1383_v1 = vpop.f32.mrb[23].mxu0 }
 0x157   :  { %v396_v2 = vadd.f32 %v395_v50, %v381_v58  ;;  %v360_v4 = vadd.f32 %v359_v57, %v1383_v1  ;;  %v382_v5 = vmul.f32 %v1383_v1, %v1383_v1 }
 0x158   :  { %v511_v6 = vadd.f32 %v510_v60, %v496_v63 }
 0x159   :  { %v397_v8 = vadd.f32 %v396_v2, %v382_v5 }
 0x15b   :  { %v1388_v9 = vpop.f32.mrb[24].mxu0 }
 0x15c   :  { %v475_v10 = vadd.f32 %v474_v62, %v1388_v9  ;;  %v497_v11 = vmul.f32 %v1388_v9, %v1388_v9  ;;  %v1393_v12 = vpop.f32.mrb[25].mxu0 }
 0x15d   :  { %v361_v14 = vadd.f32 %v360_v4, %v1393_v12  ;;  %v383_v15 = vmul.f32 %v1393_v12, %v1393_v12  ;;  %v1398_v17 = vpop.f32.mrb[26].mxu0 }
 0x15e   :  { %v512_v18 = vadd.f32 %v511_v6, %v497_v11  ;;  %v476_v20 = vadd.f32 %v475_v10, %v1398_v17  ;;  %v498_v21 = vmul.f32 %v1398_v17, %v1398_v17  ;;  %v1403_v22 = vpop.f32.mrb[27].mxu0 }
 0x15f   :  { %v398_v24 = vadd.f32 %v397_v8, %v383_v15  ;;  %v362_v25 = vadd.f32 %v361_v14, %v1403_v22  ;;  %v384_v26 = vmul.f32 %v1403_v22, %v1403_v22 }
 0x160   :  { %v513_v27 = vadd.f32 %v512_v18, %v498_v21 }
 0x161   :  { %v399_v28 = vadd.f32 %v398_v24, %v384_v26 }
 0x163   :  { %v1408_v30 = vpop.f32.mrb[28].mxu0 }
 0x164   :  { %v477_v31 = vadd.f32 %v476_v20, %v1408_v30  ;;  %v499_v36 = vmul.f32 %v1408_v30, %v1408_v30  ;;  %v1413_v37 = vpop.f32.mrb[29].mxu0 }
 0x165   :  { %v363_v40 = vadd.f32 %v362_v25, %v1413_v37  ;;  %v385_v41 = vmul.f32 %v1413_v37, %v1413_v37  ;;  %v1418_v42 = vpop.f32.mrb[30].mxu0 }
 0x166   :  { %v514_v44 = vadd.f32 %v513_v27, %v499_v36  ;;  %v478_v46 = vadd.f32 %v477_v31, %v1418_v42  ;;  %v500_v47 = vmul.f32 %v1418_v42, %v1418_v42  ;;  %v1423_v49 = vpop.f32.mrb[31].mxu0 }
 0x167   :  { %v400_v50 = vadd.f32 %v399_v28, %v385_v41  ;;  %v364_v53 = vadd.f32 %v363_v40, %v1423_v49  ;;  %v386_v54 = vmul.f32 %v1423_v49, %v1423_v49 }
 0x168   :  { %v479_v57 = vrot.slane %v478_v46, 4  ;;  %v515_v58 = vadd.f32 %v514_v44, %v500_v47 }
 0x169   :  { %v365_v60 = vrot.slane %v364_v53, 4  ;;  %v401_v62 = vadd.f32 %v400_v50, %v386_v54 }
 0x16a   :  { %v480_v63 = vadd.f32 %v479_v57, %v478_v46  ;;  %v516_v2 = vrot.slane %v515_v58, 4 }
 0x16b   :  { %v366_v4 = vadd.f32 %v365_v60, %v364_v53  ;;  %v402_v5 = vrot.slane %v401_v62, 4 }
 0x16c   :  { %v481_v6 = vrot.slane %v480_v63, 2  ;;  %v517_v8 = vadd.f32 %v516_v2, %v515_v58 }
 0x16d   :  { %v367_v10 = vrot.slane %v366_v4, 2  ;;  %v403_v11 = vadd.f32 %v402_v5, %v401_v62 }
 0x16e   :  { %v482_v14 = vadd.f32 %v481_v6, %v480_v63  ;;  %v518_v15 = vrot.slane %v517_v8, 2  ;;  %v462_v6 = vld [vmem:[%s1660_s3] sm:$0x1] }
 0x16f   :  { %v368_v18 = vadd.f32 %v367_v10, %v366_v4  ;;  %v404_v20 = vrot.slane %v403_v11, 2  ;;  %v419_v4 = vlaneseq  ;;  %v348_v10 = vld [vmem:[%s1664_s7] sm:$0x1] }
 0x170   :  { %v483_v21 = vrot.slane %v482_v14, 1  ;;  %v519_v24 = vadd.f32 %v518_v15, %v517_v8 }
 0x171   :  { %v369_v25 = vrot.slane %v368_v18, 1  ;;  %v405_v26 = vadd.f32 %v404_v20, %v403_v11  ;;  %v420_v5 = vshrl.u32 %v419_v4, 7 }
 0x172   :  { %v484_v27 = vadd.f32 %v483_v21, %v482_v14  ;;  %v520_v28 = vrot.slane %v519_v24, 1 }
 0x173   :  { %v370_v31 = vadd.f32 %v369_v25, %v368_v18  ;;  %v406_v36 = vrot.slane %v405_v26, 1  ;;  %v1431_v8 = vsub.s32 0, %v420_v5  ;;  %v463_v18 = vld [vmem:[%s1661_s4] sm:$0x1] }
 0x174   :  { %v521_v40 = vadd.f32 %v520_v28, %v519_v24  ;;  %v522_v41 = vmul.f32 0.0078125, %v484_v27  ;;  %v349_v25 = vld [vmem:[%s1665_s8] sm:$0x1] }
 0x175   :  { %v407_v44 = vadd.f32 %v406_v36, %v405_v26  ;;  %v408_v46 = vmul.f32 0.0078125, %v370_v31 }
 0x176   :  { %v523_v47 = vmul.f32 0.0078125, %v521_v40  ;;  %v524_v50 = vmul.f32 %v522_v41, %v522_v41 }
 0x177   :  { %v409_v53 = vmul.f32 0.0078125, %v407_v44  ;;  %v410_v54 = vmul.f32 %v408_v46, %v408_v46 }
 0x178   :  { %v525_v57 = vsub.f32 %v523_v47, %v524_v50 }
 0x179   :  { %v411_v58 = vsub.f32 %v409_v53, %v410_v54 }
 0x17a   :  { %v526_v60 = vmax.f32 %v525_v57, 0.0 }
 0x17b   :  { %v412_v62 = vmax.f32 %v411_v58, 0.0 }
 0x17c   :  { %v527_v63 = vadd.f32 1e-05, %v526_v60 }
 0x17d   :  { %v413_v2 = vadd.f32 1e-05, %v412_v62 }
 0x17e   :  { %1070 = vrsqrt.f32 %v527_v63 }
 0x17f   :  { %1072 = vrsqrt.f32 %v413_v2 }
 0x188   :  { %v1071_v11 = vpop.eup %1070 }
 0x189   :  { %v1073_v14 = vpop.eup %1072  ;;  %v529_v15 = vmul.f32 %v1071_v11, %v462_v6 }
 0x18a   :  { %v415_v20 = vmul.f32 %v1073_v14, %v348_v10 }
 0x18b   :  { %v530_v21 = vmul.f32 %v529_v15, %v522_v41  ;;  %v536_v24 = vrot.slane %v529_v15, %v1431_v8 }
 0x18c   :  { %v416_v26 = vmul.f32 %v415_v20, %v408_v46  ;;  %v1444_v27 = vrot.slane %v415_v20, %v1431_v8 }
 0x18d   :  { %v531_v28 = vsub.f32 %v463_v18, %v530_v21  ;;  %v553_v31 = vmul.f32 %v536_v24, %v1418_v42  ;;  %v538_v36 = vmul.f32 %v536_v24, %v1268_v33  ;;  %v539_v40 = vmul.f32 %v536_v24, %v1272_v35 }
 0x18e   :  { %v417_v44 = vsub.f32 %v349_v25, %v416_v26  ;;  %v439_v41 = vmul.f32 %v1444_v27, %v1423_v49  ;;  %v540_v47 = vmul.f32 %v536_v24, %v1288_v45  ;;  %v541_v50 = vmul.f32 %v536_v24, %v1298_v51 }
 0x18f   :  { %v558_v46 = vrot.slane %v531_v28, %v1431_v8  ;;  %v542_v53 = vmul.f32 %v536_v24, %v1308_v61  ;;  %v543_v54 = vmul.f32 %v536_v24, %v1318_v3  ;;  %v544_v42 = vmul.f32 %v536_v24, %v1328_v13 }
 0x190   :  { %v1458_v33 = vrot.slane %v417_v44, %v1431_v8  ;;  %v545_v35 = vmul.f32 %v536_v24, %v1338_v19  ;;  %v546_v57 = vmul.f32 %v536_v24, %v1348_v29  ;;  %v547_v49 = vmul.f32 %v536_v24, %v1358_v38 }
 0x191   :  { %v575_v45 = vadd.f32 %v558_v46, %v553_v31  ;;  %v560_v58 = vadd.f32 %v558_v46, %v538_v36  ;;  %v561_v51 = vadd.f32 %v558_v46, %v539_v40  ;;  %v562_v60 = vadd.f32 %v558_v46, %v540_v47 }
 0x192   :  { %v1464_v62 = vadd.f32 %v1458_v33, %v439_v41  ;;  %v563_v61 = vadd.f32 %v558_v46, %v541_v50  ;;  %v564_v3 = vadd.f32 %v558_v46, %v542_v53  ;;  %v565_v63 = vadd.f32 %v558_v46, %v543_v54 }
 0x193   :  { %v576_v13 = vmax.f32 %v560_v58, 0.0  ;;  %v577_v2 = vmax.f32 %v561_v51, 0.0  ;;  %v578_v4 = vmax.f32 %v562_v60, 0.0  ;;  %v566_v5 = vadd.f32 %v558_v46, %v544_v42 }
 0x194   :  { %v579_v6 = vmax.f32 %v563_v61, 0.0  ;;  %v580_v19 = vmax.f32 %v564_v3, 0.0  ;;  %v581_v10 = vmax.f32 %v565_v63, 0.0  ;;  %v567_v29 = vadd.f32 %v558_v46, %v545_v35 }
 0x195   :  { %v592_v11 = vpack.c.bf16 %v577_v2, %v576_v13  ;;  %v582_v38 = vmax.f32 %v566_v5, 0.0  ;;  %v568_v14 = vadd.f32 %v558_v46, %v546_v57  ;;  %v569_v15 = vadd.f32 %v558_v46, %v547_v49 }
 0x196   :  { %v593_v18 = vpack.c.bf16 %v579_v6, %v578_v4  ;;  %v594_v20 = vpack.c.bf16 %v581_v10, %v580_v19  ;;  %v583_v21 = vmax.f32 %v567_v29, 0.0  ;;  %v548_v25 = vmul.f32 %v536_v24, %v1368_v52 }
 0x197   :  { %1005 = vmatprep.mubr.bf16.mxu1 %v592_v11  ;;  %v584_v26 = vmax.f32 %v568_v14, 0.0  ;;  %v585_v28 = vmax.f32 %v569_v15, 0.0  ;;  %v549_v31 = vmul.f32 %v536_v24, %v1378_v59  ;;  %v550_v36 = vmul.f32 %v536_v24, %v1388_v9 }
 0x198   :  { %1006 = vmatmul.mubr.bf16.vlgmr.msra.gmra.mrb[0].mxu1 %v593_v18  ;;  %v595_v40 = vpack.c.bf16 %v583_v21, %v582_v38  ;;  %v570_v44 = vadd.f32 %v558_v46, %v548_v25  ;;  %v551_v41 = vmul.f32 %v536_v24, %v1398_v17  ;;  %v552_v47 = vmul.f32 %v536_v24, %v1408_v30 }
 0x199   :  { %1009 = vmatprep.mubr.bf16.mxu1 %v594_v20  ;;  %v596_v50 = vpack.c.bf16 %v585_v28, %v584_v26  ;;  %v571_v53 = vadd.f32 %v558_v46, %v549_v31  ;;  %v572_v54 = vadd.f32 %v558_v46, %v550_v36  ;;  %v591_v42 = vmax.f32 %v575_v45, 0.0 }
 0x19a   :  { %v586_v52 = vmax.f32 %v570_v44, 0.0  ;;  %v573_v35 = vadd.f32 %v558_v46, %v551_v41  ;;  %v574_v57 = vadd.f32 %v558_v46, %v552_v47  ;;  %v437_v59 = vmul.f32 %v1444_v27, %v1403_v22 }
 0x19b   :  { %v587_v49 = vmax.f32 %v571_v53, 0.0  ;;  %v588_v9 = vmax.f32 %v572_v54, 0.0  ;;  %v424_v58 = vmul.f32 %v1444_v27, %v1270_v34  ;;  %v425_v17 = vmul.f32 %v1444_v27, %v1280_v39 }
 0x19c   :  { %v589_v30 = vmax.f32 %v573_v35, 0.0  ;;  %v590_v24 = vmax.f32 %v574_v57, 0.0  ;;  %v1478_v51 = vadd.f32 %v1458_v33, %v437_v59  ;;  %v426_v45 = vmul.f32 %v1444_v27, %v1293_v48 }
 0x19d   :  { %v597_v46 = vpack.c.bf16 %v587_v49, %v586_v52  ;;  %v427_v22 = vmul.f32 %v1444_v27, %v1303_v55  ;;  %v428_v60 = vmul.f32 %v1444_v27, %v1313_v0  ;;  %v429_v34 = vmul.f32 %v1444_v27, %v1323_v7 }
 0x19e   :  { %v598_v61 = vpack.c.bf16 %v589_v30, %v588_v9  ;;  %v599_v39 = vpack.c.bf16 %v591_v42, %v590_v24  ;;  %v430_v3 = vmul.f32 %v1444_v27, %v1333_v16  ;;  %v431_v63 = vmul.f32 %v1444_v27, %v1343_v23 }
 0x19f   :  { %v432_v48 = vmul.f32 %v1444_v27, %v1353_v32  ;;  %v433_v55 = vmul.f32 %v1444_v27, %v1363_v43  ;;  %v434_v0 = vmul.f32 %v1444_v27, %v1373_v56  ;;  %v435_v7 = vmul.f32 %v1444_v27, %v1383_v1 }
 0x1a0   :  { %1010 = vmatmul.mubr.bf16.gmra.mrb[4].mxu1 %v595_v40  ;;  %v436_v13 = vmul.f32 %v1444_v27, %v1393_v12  ;;  %v438_v16 = vmul.f32 %v1444_v27, %v1413_v37  ;;  %v1505_v23 = vadd.f32 %v1458_v33, %v424_v58  ;;  %v1508_v32 = vadd.f32 %v1458_v33, %v425_v17 }
 0x1a1   :  { %1013 = vmatprep.mubr.bf16.mxu1 %v596_v50  ;;  %v1511_v43 = vadd.f32 %v1458_v33, %v426_v45  ;;  %v1514_v56 = vadd.f32 %v1458_v33, %v427_v22  ;;  %v1517_v1 = vadd.f32 %v1458_v33, %v428_v60  ;;  %v1520_v12 = vadd.f32 %v1458_v33, %v429_v34 }
 0x1a2   :  { %v1523_v37 = vadd.f32 %v1458_v33, %v430_v3  ;;  %v1526_v27 = vadd.f32 %v1458_v33, %v431_v63  ;;  %v1529_v2 = vadd.f32 %v1458_v33, %v432_v48  ;;  %v1532_v4 = vadd.f32 %v1458_v33, %v433_v55 }
 0x1a3   :  { %v1535_v5 = vadd.f32 %v1458_v33, %v434_v0  ;;  %v1538_v6 = vadd.f32 %v1458_v33, %v435_v7  ;;  %v1541_v19 = vadd.f32 %v1458_v33, %v436_v13  ;;  %v1544_v10 = vadd.f32 %v1458_v33, %v438_v16 }
 0x1a8   :  { %1014 = vmatmul.mubr.bf16.gmra.mrb[8].mxu1 %v597_v46 }
 0x1a9   :  { %1017 = vmatprep.mubr.bf16.mxu1 %v598_v61 }
 0x1b0   :  { %1018 = vmatmul.mubr.bf16.gmra.mrb[12].mxu1 %v599_v39 }
 0x26b   :  { %v1546_v29 = vpop.f32.mrb[0].mxu1 }
 0x26c   :  { %v1548_v11 = vpop.f32.mrb[1].mxu1  ;;  %v786_v20 = vmul.f32 %v1546_v29, %v1546_v29 }
 0x26d   :  { %v1550_v38 = vpop.f32.mrb[2].mxu1  ;;  %v784_v15 = vmul.f32 %v1548_v11, %v1548_v11 }
 0x26e   :  { %v1552_v14 = vpop.f32.mrb[3].mxu1  ;;  %v787_v26 = vmul.f32 %v1550_v38, %v1550_v38 }
 0x26f   :  { %v763_v18 = vadd.f32 %v1552_v14, %v1548_v11  ;;  %v785_v33 = vmul.f32 %v1552_v14, %v1552_v14 }
 0x271   :  { %v764_v21 = vadd.f32 %v1546_v29, %v763_v18  ;;  %v800_v25 = vadd.f32 %v785_v33, %v784_v15 }
 0x273   :  { %v801_v28 = vadd.f32 %v800_v25, %v786_v20  ;;  %v1565_v31 = vpop.f32.mrb[4].mxu1  ;;  %v765_v36 = vadd.f32 %v1550_v38, %v764_v21 }
 0x274   :  { %v1568_v40 = vpop.f32.mrb[5].mxu1  ;;  %v790_v35 = vmul.f32 %v1565_v31, %v1565_v31 }
 0x275   :  { %v766_v44 = vadd.f32 %v765_v36, %v1568_v40  ;;  %v788_v41 = vmul.f32 %v1568_v40, %v1568_v40  ;;  %v802_v47 = vadd.f32 %v801_v28, %v787_v26  ;;  %v1573_v50 = vpop.f32.mrb[6].mxu1 }
 0x276   :  { %v1575_v53 = vpop.f32.mrb[7].mxu1  ;;  %v791_v49 = vmul.f32 %v1573_v50, %v1573_v50 }
 0x277   :  { %v803_v54 = vadd.f32 %v802_v47, %v788_v41  ;;  %v767_v42 = vadd.f32 %v766_v44, %v1575_v53  ;;  %v789_v52 = vmul.f32 %v1575_v53, %v1575_v53 }
 0x279   :  { %v768_v57 = vadd.f32 %v1565_v31, %v767_v42  ;;  %v804_v59 = vadd.f32 %v803_v54, %v789_v52 }
 0x27b   :  { %v805_v9 = vadd.f32 %v804_v59, %v790_v35  ;;  %v1585_v58 = vpop.f32.mrb[8].mxu1  ;;  %v769_v17 = vadd.f32 %v1573_v50, %v768_v57 }
 0x27c   :  { %v1588_v30 = vpop.f32.mrb[9].mxu1  ;;  %v794_v3 = vmul.f32 %v1585_v58, %v1585_v58 }
 0x27d   :  { %v770_v24 = vadd.f32 %v769_v17, %v1588_v30  ;;  %v792_v45 = vmul.f32 %v1588_v30, %v1588_v30  ;;  %v806_v46 = vadd.f32 %v805_v9, %v791_v49  ;;  %v1593_v22 = vpop.f32.mrb[10].mxu1 }
 0x27e   :  { %v1595_v60 = vpop.f32.mrb[11].mxu1  ;;  %v795_v55 = vmul.f32 %v1593_v22, %v1593_v22 }
 0x27f   :  { %v807_v34 = vadd.f32 %v806_v46, %v792_v45  ;;  %v771_v61 = vadd.f32 %v770_v24, %v1595_v60  ;;  %v793_v39 = vmul.f32 %v1595_v60, %v1595_v60 }
 0x281   :  { %v772_v63 = vadd.f32 %v1585_v58, %v771_v61  ;;  %v808_v48 = vadd.f32 %v807_v34, %v793_v39 }
 0x283   :  { %v809_v0 = vadd.f32 %v808_v48, %v794_v3  ;;  %v1019_v7 = vpop.f32.mrb[12].mxu1  ;;  %v773_v13 = vadd.f32 %v1593_v22, %v772_v63 }
 0x284   :  { %v746_v16 = vpop.f32.mrb[13].mxu1  ;;  %v798_v36 = vmul.f32 %v1019_v7, %v1019_v7 }
 0x285   :  { %v774_v15 = vadd.f32 %v773_v13, %v746_v16  ;;  %v796_v18 = vmul.f32 %v746_v16, %v746_v16  ;;  %v810_v33 = vadd.f32 %v809_v0, %v795_v55  ;;  %v1020_v20 = vpop.f32.mrb[14].mxu1 }
 0x286   :  { %v749_v21 = vpop.f32.mrb[15].mxu1  ;;  %v799_v47 = vmul.f32 %v1020_v20, %v1020_v20 }
 0x287   :  { %v811_v25 = vadd.f32 %v810_v33, %v796_v18  ;;  %v775_v26 = vadd.f32 %v774_v15, %v749_v21  ;;  %v797_v28 = vmul.f32 %v749_v21, %v749_v21  ;;  %v761_v15 = vld [vmem:[%s1662_s5] sm:$0x1]  ;;  %s1178_s5 = smov [#allocation8]  }
 0x289   :  { %v776_v44 = vadd.f32 %v1019_v7, %v775_v26  ;;  %v812_v41 = vadd.f32 %v811_v25, %v797_v28  ;;  %v762_v25 = vld [vmem:[%s1663_s6] sm:$0x1]  ;;  %s928_s6 = sshll.u32 %s1178_s5, 4  ;;  %s929_s6 = int_to_ptr.vmem [resolvable:$true] %s928_s6 }
 0x28a   :  { %s1142_s13 = scalar_lea.vmem %s929_s6, 2048  ;;  %p1147_p11 = scmp.lt.s32.totalorder %s929_s6, %s929_s6 }
 0x28b   :  { %v777_v54 = vadd.f32 %v1020_v20, %v776_v44  ;;  %v813_v42 = vadd.f32 %v812_v41, %v798_v36  ;;  %p1143_p10 = scmp.ne.s32.totalorder %s929_s6, %s1142_s13  ;;  %p1148_p12 = scmp.lt.s32.totalorder %s1142_s13, %s1142_s13 }
 0x28d   :  { %v778_v52 = vrot.slane %v777_v54, 4  ;;  %v814_v35 = vadd.f32 %v813_v42, %v799_v47  ;;  %p1149_p13 = por %p1148_p12, %p1147_p11 }
 0x28f   :  { %v779_v57 = vadd.f32 %v778_v52, %v777_v54  ;;  %v815_v59 = vrot.slane %v814_v35, 4  ;;  %p1150_p0 = pnand %p1149_p13, %p1143_p10 }
 0x291   :  { %v780_v49 = vrot.slane %v779_v57, 2  ;;  %v816_v9 = vadd.f32 %v815_v59, %v814_v35 }
 0x293   :  { %v781_v17 = vadd.f32 %v780_v49, %v779_v57  ;;  %v817_v24 = vrot.slane %v816_v9, 2 }
 0x295   :  { %v782_v45 = vrot.slane %v781_v17, 1  ;;  %v818_v46 = vadd.f32 %v817_v24, %v816_v9 }
 0x297   :  { %v783_v34 = vadd.f32 %v782_v45, %v781_v17  ;;  %v819_v61 = vrot.slane %v818_v46, 1 }
 0x299   :  { %v820_v39 = vadd.f32 %v819_v61, %v818_v46  ;;  %v821_v3 = vmul.f32 0.0078125, %v783_v34 }
 0x29b   :  { %v822_v63 = vmul.f32 0.0078125, %v820_v39  ;;  %v823_v48 = vmul.f32 %v821_v3, %v821_v3 }
 0x29d   :  { %v824_v55 = vsub.f32 %v822_v63, %v823_v48 }
 0x29f   :  { %v825_v0 = vmax.f32 %v824_v55, 0.0 }
 0x2a1   :  { %v826_v13 = vadd.f32 1e-05, %v825_v0 }
 0x2a3   :  { %1074 = vrsqrt.f32 %v826_v13 }
 0x2ad   :  { %v1075_v18 = vpop.eup %1074 }
 0x2ae   :  { %v828_v33 = vmul.f32 %v1075_v18, %v761_v15 }
 0x2b0   :  { %v829_v26 = vmul.f32 %v828_v33, %v821_v3  ;;  %v835_v28 = vrot.slane %v828_v33, %v1431_v8 }
 0x2b2   :  { %v830_v36 = vsub.f32 %v762_v25, %v829_v26  ;;  %v850_v44 = vmul.f32 %v835_v28, %v749_v21  ;;  %v837_v41 = vmul.f32 %v835_v28, %v1548_v11  ;;  %v838_v47 = vmul.f32 %v835_v28, %v1552_v14 }
 0x2b3   :  { %v839_v54 = vmul.f32 %v1546_v29, %v835_v28  ;;  %v840_v42 = vmul.f32 %v1550_v38, %v835_v28  ;;  %v841_v52 = vmul.f32 %v835_v28, %v1568_v40  ;;  %v842_v35 = vmul.f32 %v835_v28, %v1575_v53 }
 0x2b4   :  { %v857_v57 = vrot.slane %v830_v36, %v1431_v8  ;;  %v843_v59 = vmul.f32 %v1565_v31, %v835_v28  ;;  %v844_v49 = vmul.f32 %v1573_v50, %v835_v28  ;;  %v845_v21 = vmul.f32 %v835_v28, %v1588_v30 }
 0x2b5   :  { %v846_v11 = vmul.f32 %v835_v28, %v1595_v60  ;;  %v847_v14 = vmul.f32 %v1585_v58, %v835_v28  ;;  %v848_v29 = vmul.f32 %v1593_v22, %v835_v28  ;;  %v849_v9 = vmul.f32 %v835_v28, %v746_v16 }
 0x2b6   :  { %v872_v38 = vadd.f32 %v857_v57, %v850_v44  ;;  %v851_v17 = vmul.f32 %v1019_v7, %v835_v28  ;;  %v852_v40 = vmul.f32 %v1020_v20, %v835_v28  ;;  %v859_v24 = vadd.f32 %v857_v57, %v837_v41 }
 0x2b7   :  { %v860_v53 = vadd.f32 %v857_v57, %v838_v47  ;;  %v861_v45 = vadd.f32 %v857_v57, %v839_v54  ;;  %v862_v8 = vadd.f32 %v857_v57, %v840_v42  ;;  %v863_v46 = vadd.f32 %v857_v57, %v841_v52 }
 0x2b8   :  { %v888_v31 = vadd.f32 %v872_v38, %v1478_v51  ;;  %v864_v50 = vadd.f32 %v857_v57, %v842_v35  ;;  %v865_v34 = vadd.f32 %v857_v57, %v843_v59  ;;  %v866_v30 = vadd.f32 %v857_v57, %v844_v49 }
 0x2b9   :  { %v867_v61 = vadd.f32 %v857_v57, %v845_v21  ;;  %v868_v60 = vadd.f32 %v857_v57, %v846_v11  ;;  %v869_v39 = vadd.f32 %v857_v57, %v847_v14  ;;  %v870_v58 = vadd.f32 %v857_v57, %v848_v29 }
 0x2ba   :  { %v904_v3 = vmax.f32 %v888_v31, 0.0  ;;  %v871_v22 = vadd.f32 %v857_v57, %v849_v9  ;;  %v873_v16 = vadd.f32 %v857_v57, %v851_v17  ;;  %v874_v63 = vadd.f32 %v857_v57, %v852_v40 }
 0x2bb   :  { %v875_v7 = vadd.f32 %v859_v24, %v1505_v23  ;;  %v876_v20 = vadd.f32 %v860_v53, %v1508_v32  ;;  %v877_v48 = vadd.f32 %v861_v45, %v1511_v43  ;;  %v878_v55 = vadd.f32 %v862_v8, %v1514_v56 }
 0x2bc   :  { %920 = vst [vmem:[#allocation8 + $0x68] sm:$0xff] %v904_v3  ;;  %v879_v51 = vadd.f32 %v863_v46, %v1517_v1  ;;  %v880_v0 = vadd.f32 %v864_v50, %v1520_v12  ;;  %v881_v13 = vadd.f32 %v865_v34, %v1523_v37  ;;  %v882_v15 = vadd.f32 %v866_v30, %v1526_v27 }
 0x2bd   :  { %v883_v18 = vadd.f32 %v867_v61, %v1529_v2  ;;  %v884_v33 = vadd.f32 %v868_v60, %v1532_v4  ;;  %v885_v23 = vadd.f32 %v869_v39, %v1535_v5  ;;  %v886_v32 = vadd.f32 %v870_v58, %v1538_v6 }
 0x2be   :  { %v887_v43 = vadd.f32 %v871_v22, %v1541_v19  ;;  %v889_v56 = vadd.f32 %v873_v16, %v1544_v10  ;;  %v890_v1 = vadd.f32 %v874_v63, %v1464_v62  ;;  %v891_v25 = vmax.f32 %v875_v7, 0.0 }
 0x2bf   :  { %v892_v12 = vmax.f32 %v876_v20, 0.0  ;;  %v893_v26 = vmax.f32 %v877_v48, 0.0  ;;  %v894_v37 = vmax.f32 %v878_v55, 0.0  ;;  %v895_v28 = vmax.f32 %v879_v51, 0.0 }
 0x2c0   :  { %v896_v27 = vmax.f32 %v880_v0, 0.0  ;;  %v897_v2 = vmax.f32 %v881_v13, 0.0  ;;  %v898_v4 = vmax.f32 %v882_v15, 0.0  ;;  %v899_v36 = vmax.f32 %v883_v18, 0.0  ;;  %907 = vst [vmem:[#allocation8] sm:$0xff] %v891_v25 }
 0x2c1   :  { %v900_v5 = vmax.f32 %v884_v33, 0.0  ;;  %v901_v6 = vmax.f32 %v885_v23, 0.0  ;;  %v902_v44 = vmax.f32 %v886_v32, 0.0  ;;  %v903_v19 = vmax.f32 %v887_v43, 0.0  ;;  %908 = vst [vmem:[#allocation8 + $0x8] sm:$0xff] %v892_v12  ;;  %909 = vst [vmem:[#allocation8 + $0x10] sm:$0xff] %v893_v26 }
 0x2c2   :  { %910 = vst [vmem:[#allocation8 + $0x18] sm:$0xff] %v894_v37  ;;  %911 = vst [vmem:[#allocation8 + $0x20] sm:$0xff] %v895_v28  ;;  %v905_v62 = vmax.f32 %v889_v56, 0.0  ;;  %v906_v10 = vmax.f32 %v890_v1, 0.0 }
 0x2c3   :  { %912 = vst [vmem:[#allocation8 + $0x28] sm:$0xff] %v896_v27  ;;  %913 = vst [vmem:[#allocation8 + $0x30] sm:$0xff] %v897_v2 }
 0x2c4   :  { %914 = vst [vmem:[#allocation8 + $0x38] sm:$0xff] %v898_v4  ;;  %915 = vst [vmem:[#allocation8 + $0x40] sm:$0xff] %v899_v36 }
 0x2c5   :  { %916 = vst [vmem:[#allocation8 + $0x48] sm:$0xff] %v900_v5  ;;  %917 = vst [vmem:[#allocation8 + $0x50] sm:$0xff] %v901_v6 }
 0x2c6   :  { %918 = vst [vmem:[#allocation8 + $0x58] sm:$0xff] %v902_v44  ;;  %919 = vst [vmem:[#allocation8 + $0x60] sm:$0xff] %v903_v19 }
 0x2c7   :  { %921 = vst [vmem:[#allocation8 + $0x70] sm:$0xff] %v905_v62  ;;  %922 = vst [vmem:[#allocation8 + $0x78] sm:$0xff] %v906_v10 }
 0x2c8   :  { %1153 = shalt.err (!%p1150_p0)
}
 0x2c9   :  { %s1154_s16 = scalar_lea.hbm %s1666_s9, 2048 }
 0x2ca   :  { %p1155_p1 = scmp.ne.s32.totalorder %s1666_s9, %s1154_s16  ;;  %p1158_p2 = scmp.lt.u32.totalorder %s1154_s16, %s1666_s9 }
 0x2cc   :  { %p1160_p3 = pnand %p1158_p2, %p1155_p1 }
 0x2ce   :  { %1163 = shalt.err (!%p1160_p3)
}
 0x2cf   :  { %934 = dma.vmem_to_hbm [thread:$0]  %s929_s6, 2048, %s1666_s9, [#allocation4], %s1171_s19, %s1171_s19, %s1172_s20  }
 0x2d0   :  { %1168 = dma.done.wait [#allocation4], 2048  }
 0x2d1   :  { %1169 = vsyncadd [#allocation4], 4294965248 }
 0x2d2   :  { %938 = vsyncpa [#allocation3], 1 }
 0x2d3   :  { %939 = vsyncpa [#allocation6], 1 }
 0x2d4   :  { %940 = vsyncpa [#allocation4], 1 }

</bundles_post_ra>
